<compile_context>
chip_gen: v7x
topology: tpu7x:2x2x1
jax: 0.10.0
libtpu: 0.0.40
codegen_flags: <defaults>
</compile_context>

<pallas_src>
from functools import partial

import jax
import jax.numpy as jnp
from jax.experimental import pallas as pl
from jax.experimental.pallas import tpu as pltpu


# ----------------------------------------------------------------------------
# Helpers
# ----------------------------------------------------------------------------
def _round_up(x, m):
    return (x + m - 1) // m * m


def _pick_tile(padded_dim, candidates):
    for c in candidates:
        if padded_dim % c == 0:
            return c
    return padded_dim  # unreachable when smallest candidate divides padded_dim


_VMEM_CAP_CACHE = [None]


def _vmem_cap_bytes():
    """Physical VMEM minus 16 MiB headroom (48 MiB fallback if unknown)."""
    if _VMEM_CAP_CACHE[0] is None:
        try:
            info = pltpu.get_tpu_info()
            phys = int(getattr(info, "vmem_capacity_bytes", 64 << 20))
        except Exception:  # pragma: no cover - conservative fallback
            phys = 64 << 20
        _VMEM_CAP_CACHE[0] = max(phys - (16 << 20), 32 << 20)
    return _VMEM_CAP_CACHE[0]


# ----------------------------------------------------------------------------
# Pallas kernel: tiled  y = x @ W + b  with adapter-indexed stacked weights.
#   tile_aid (scalar-prefetched, SMEM) maps each M row-tile -> adapter index,
#   used by the weight/bias index_maps.  The f32 accumulator lives in VMEM
#   scratch across the K axis; it is initialized with the broadcast bias at
#   k==0 and only cast/stored on the last K step.
# ----------------------------------------------------------------------------
def _stacked_linear_kernel(aid_ref, x_ref, w_ref, b_ref, o_ref, acc_ref):
    k = pl.program_id(2)

    @pl.when(k == 0)
    def _():
        # bias block is (1, tn); broadcast once per (i, j) tile.
        acc_ref[...] = jnp.broadcast_to(
            b_ref[...].astype(jnp.float32), acc_ref.shape)

    acc_ref[...] += jnp.dot(x_ref[...], w_ref[...],
                            preferred_element_type=jnp.float32)

    @pl.when(k == pl.num_programs(2) - 1)
    def _():
        o_ref[...] = acc_ref[...].astype(o_ref.dtype)


def stacked_linear(x_pad, w_all, b_all, tile_aid, *, tm, tn, tk):
    """y[i*tm:(i+1)*tm] = x_pad[tile] @ w_all[tile_aid[i]] + b_all[tile_aid[i]].

    x_pad:    (M, K)        M % tm == 0, K % tk == 0
    w_all:    (A, K, N)     stacked per-adapter transposed weights, N % tn == 0
    b_all:    (A, 1, N)     stacked per-adapter biases
    tile_aid: (M // tm,)    int32 adapter index per row-tile (scalar prefetch)
    """
    M, K = x_pad.shape
    A, K2, N = w_all.shape
    assert K == K2 and M % tm == 0 and N % tn == 0 and K % tk == 0
    m_tiles, n_tiles, k_tiles = M // tm, N // tn, K // tk
    # N axis leads so that a 2-TC chip can shard N (each core streams half of
    # W); K (the reduction) stays innermost for the resident accumulator.
    grid = (n_tiles, m_tiles, k_tiles)

    x_item = jnp.dtype(x_pad.dtype).itemsize
    w_item = jnp.dtype(w_all.dtype).itemsize

    # Double-buffered inputs/outputs + f32 accumulator, with headroom, capped
    # at (physical VMEM - 16 MiB) for the current generation.
    buf_bytes = (2 * (tm * tk * x_item + tk * tn * w_item + tn * w_item
                      + tm * tn * x_item) + tm * tn * 4)
    vmem_limit = int(min(max(buf_bytes + (4 << 20), 16 << 20),
                         _vmem_cap_bytes()))

    # Small-batch path is weight-streaming bound: shard only the N axis across
    # TensorCores (M marked "arbitrary") so total weight HBM traffic stays 1x.
    if m_tiles <= 2:
        dims = ("parallel", "arbitrary", "arbitrary")
    else:
        dims = ("parallel", "parallel", "arbitrary")

    cost = pl.CostEstimate(
        flops=2 * M * K * N,
        transcendentals=0,
        bytes_accessed=int(x_pad.size * x_item + w_all.size * w_item
                           + b_all.size * w_item + M * N * x_item))

    return pl.pallas_call(
        _stacked_linear_kernel,
        out_shape=jax.ShapeDtypeStruct((M, N), x_pad.dtype),
        grid_spec=pltpu.PrefetchScalarGridSpec(
            num_scalar_prefetch=1,
            grid=grid,
            in_specs=[
                pl.BlockSpec((tm, tk), lambda j, i, k, aid: (i, k)),
                # adapter-indexed weight tile; leading dim squeezed out
                pl.BlockSpec((None, tk, tn),
                             lambda j, i, k, aid: (aid[i], k, j)),
                pl.BlockSpec((None, 1, tn),
                             lambda j, i, k, aid: (aid[i], 0, j)),
            ],
            out_specs=pl.BlockSpec((tm, tn), lambda j, i, k, aid: (i, j)),
            scratch_shapes=[pltpu.VMEM((tm, tn), jnp.float32)],
        ),
        compiler_params=pltpu.CompilerParams(
            dimension_semantics=dims,
            vmem_limit_bytes=vmem_limit),
        cost_estimate=cost,
    )(tile_aid, x_pad, w_all, b_all)


# ----------------------------------------------------------------------------
# jit-fused dispatch helpers (pad / gather / kernel / un-permute in one trace)
# ----------------------------------------------------------------------------
@partial(jax.jit, static_argnames=("k_pad", "out_f", "tm", "tn", "tk"))
def _single_adapter_call(x, w_stacked, b_stacked, *, k_pad, out_f,
                         tm, tn, tk):
    batch, in_f = x.shape
    x = x.astype(w_stacked.dtype)
    m_pad = _round_up(max(batch, 1), tm)
    if (batch, in_f) != (m_pad, k_pad):
        x_pad = jnp.zeros((m_pad, k_pad), x.dtype).at[:batch, :in_f].set(x)
    else:
        x_pad = x
    tile_aid = jnp.zeros((m_pad // tm,), jnp.int32)
    y_pad = stacked_linear(x_pad, w_stacked, b_stacked, tile_aid,
                           tm=tm, tn=tn, tk=tk)
    return y_pad[:batch, :out_f]


@partial(jax.jit, static_argnames=("k_pad", "out_f", "tm", "tn", "tk"))
def _mixed_batch_call(x, perm_ix, gather_back, tile_aid, w_all, b_all, *,
                      k_pad, out_f, tm, tn, tk):
    _, in_f = x.shape
    x = x.astype(w_all.dtype)
    m_total = perm_ix.shape[0]
    if in_f != k_pad:
        # gather + K-pad fused in one jit trace -> single x materialization.
        x_perm = jnp.zeros((m_total, k_pad), x.dtype).at[:, :in_f].set(
            x[perm_ix])
    else:
        x_perm = x[perm_ix]
    y_pad = stacked_linear(x_perm, w_all, b_all, tile_aid,
                           tm=tm, tn=tn, tk=tk)
    return y_pad[gather_back, :out_f]


# ----------------------------------------------------------------------------
# nn.Linear stand-in: PyTorch-layout params + precomputed padded kernel copies.
# ----------------------------------------------------------------------------
class LinearParams:
    def __init__(self, weight, bias=None, param_dtype=None):
        self.weight = weight            # (out_features, in_features), PyTorch layout
        out_f, in_f = weight.shape
        if bias is None:                # PyTorch nn.Linear allows bias=None
            bias = jnp.zeros((out_f,), weight.dtype)
        self.bias = bias                # (out_features,)
        self.in_features = in_f
        self.out_features = out_f
        self.k_pad = _round_up(in_f, 128)
        self.n_pad = _round_up(out_f, 128)
        # Precision policy: compute in the parameter dtype (matches PyTorch).
        # Passing param_dtype=jnp.bfloat16 halves weight HBM bytes and unlocks
        # bf16 MXU peak on every generation.
        dtype = param_dtype if param_dtype is not None else weight.dtype
        # Precompute ONCE: transposed + zero-padded weight (1, K_pad, N_pad)
        # and bias (1, 1, N_pad), ready to stream into the kernel (and to be
        # stacked with other adapters for mixed-batch dispatch).
        w_t = jnp.zeros((self.k_pad, self.n_pad), dtype)
        w_t = w_t.at[:in_f, :out_f].set(weight.astype(dtype).T)
        self.w_stacked = w_t[None]
        b = jnp.zeros((self.n_pad,), dtype).at[:out_f].set(bias.astype(dtype))
        self.b_stacked = b[None, None, :]

    def __call__(self, x):
        batch, _ = x.shape
        # tm=128 keeps weight streaming at 1/16th of a tm=8 fallback; 256 for
        # big batches cuts grid-step overhead further.
        tm = 256 if batch >= 512 else 128
        tk = _pick_tile(self.k_pad, (2048, 1024, 512, 256, 128))
        tn = _pick_tile(self.n_pad, (1024, 512, 256, 128))
        return _single_adapter_call(
            x, self.w_stacked, self.b_stacked,
            k_pad=self.k_pad, out_f=self.out_features, tm=tm, tn=tn, tk=tk)

    def copy(self):
        return LinearParams(self.weight, self.bias,
                            param_dtype=self.w_stacked.dtype)


# ----------------------------------------------------------------------------
# ModulesToSaveWrapper — forward-pass semantics of the PyTorch module.
# ----------------------------------------------------------------------------
class ModulesToSaveWrapper:
    def __init__(self, module_to_save, adapter_name):
        self.original_module = module_to_save
        self.modules_to_save = {}
        self._active_adapter = adapter_name
        self._disable_adapters = False
        self._stack_cache = {}     # tuple(unique adapters) -> (w_all, b_all)
        self._dispatch_cache = {}  # tuple(adapter_names)   -> index tables
        self.update(adapter_name)
        # check_module(): forbidden-class checks are PyTorch-container specific
        # and have no runtime effect here.

    # --- bookkeeping ---------------------------------------------------------
    @property
    def disable_adapters(self):
        return self._disable_adapters

    @property
    def active_adapter(self):
        return self._active_adapter

    def update(self, adapter_name):
        # copy.deepcopy(original_module) — parameters copied verbatim.
        # TODO(synk): requires_grad_ / accelerate-hook / deepspeed handling has
        # no JAX equivalent (gradient masking happens at the optimizer level).
        self.modules_to_save[adapter_name] = self.original_module.copy()
        self._stack_cache.clear()
        self._dispatch_cache.clear()

    def enable_adapters(self, enabled: bool):
        if self._disable_adapters is not enabled:
            return
        self._disable_adapters = not enabled

    def set_adapter(self, adapter_name: str):
        if adapter_name not in self.modules_to_save:
            raise ValueError(f"Adapter {adapter_name} not found")
        self._active_adapter = adapter_name

    # --- forward -------------------------------------------------------------
    def _check_forward_args(self, x, *args, **kwargs):
        adapter_names = kwargs.get("adapter_names", None)
        if adapter_names is None:
            return
        if len(x) != len(adapter_names):
            raise ValueError(
                "Length of `adapter_names` should be the same as the number "
                f"of inputs, but got {len(adapter_names)} and {len(x)} "
                "respectively.")

    def _mixed_batch_forward(self, x, *args, adapter_names, **kwargs):
        # Single-kernel mixed-batch dispatch: rows are grouped by adapter on
        # the host (adapter_names is a static Python list), each group padded
        # to a whole 128-row tile, and the per-tile adapter id is
        # scalar-prefetched so one pallas_call streams each adapter's weights
        # once per row-tile (not once per 8 rows).
        batch, in_f = x.shape
        unique_adapters = list(dict.fromkeys(adapter_names))  # stable order
        params = [self.original_module if name == "__base__"
                  else self.modules_to_save[name] for name in unique_adapters]
        ref = params[0]

        # TODO(synk): caches assume adapter params are not replaced in place
        # between calls for the same adapter combination.
        stack_key = tuple(unique_adapters)
        if stack_key not in self._stack_cache:
            self._stack_cache[stack_key] = (
                jnp.concatenate([p.w_stacked for p in params], axis=0),
                jnp.concatenate([p.b_stacked for p in params], axis=0))
        w_all, b_all = self._stack_cache[stack_key]

        tm = 128
        tk = _pick_tile(ref.k_pad, (2048, 1024, 512, 256, 128))
        tn = _pick_tile(ref.n_pad, (1024, 512, 256, 128))

        dispatch_key = tuple(adapter_names)
        if dispatch_key not in self._dispatch_cache:
            perm, tile_aid, pos_of = [], [], {}
            for a_idx, name in enumerate(unique_adapters):
                rows = [i for i, n in enumerate(adapter_names) if n == name]
                padded_rows = rows + [rows[-1]] * (
                    _round_up(len(rows), tm) - len(rows))
                for r in padded_rows:
                    if r not in pos_of:
                        pos_of[r] = len(perm)
                    perm.append(r)
                tile_aid.extend([a_idx] * (len(padded_rows) // tm))
            self._dispatch_cache[dispatch_key] = (
                jnp.asarray(perm, jnp.int32),
                jnp.asarray(tile_aid, jnp.int32),
                jnp.asarray([pos_of[i] for i in range(batch)], jnp.int32))
        perm_ix, tile_aid, gather_back = self._dispatch_cache[dispatch_key]

        return _mixed_batch_call(
            x, perm_ix, gather_back, tile_aid, w_all, b_all,
            k_pad=ref.k_pad, out_f=ref.out_features, tm=tm, tn=tn, tk=tk)

    def forward(self, x, *args, **kwargs):
        self._check_forward_args(x, *args, **kwargs)
        adapter_names = kwargs.pop("adapter_names", None)
        if self.disable_adapters or self.active_adapter not in self.modules_to_save:
            return self.original_module(x, *args, **kwargs)
        if adapter_names is None:
            return self.modules_to_save[self.active_adapter](x, *args, **kwargs)
        return self._mixed_batch_forward(
            x, *args, adapter_names=adapter_names, **kwargs)

    __call__ = forward


# ----------------------------------------------------------------------------
# Demo / self-test
# ----------------------------------------------------------------------------
if __name__ == "__main__":
    key = jax.random.PRNGKey(0)
    k_x, k_w, k_b, k_dw = jax.random.split(key, 4)

    batch, in_features, out_features = 8, 32, 64

    x = jax.random.normal(k_x, (batch, in_features), dtype=jnp.float32)

    # Deterministic "original" Linear params (PyTorch (out, in) layout).
    w0 = jax.random.normal(k_w, (out_features, in_features), jnp.float32) * 0.05
    b0 = jax.random.normal(k_b, (out_features,), jnp.float32) * 0.05
    original = LinearParams(w0, b0)

    wrapper = ModulesToSaveWrapper(original, adapter_name="default")

    # Simulate the adapter copy having been fine-tuned (deterministically),
    # so the three dispatch paths are distinguishable.
    dw = jax.random.normal(k_dw, (out_features, in_features), jnp.float32) * 0.01
    wrapper.modules_to_save["default"] = LinearParams(w0 + dw, b0 + 0.1)

    # 1) Active adapter path.
    y_adapter = wrapper(x)
    jax.block_until_ready(y_adapter)

    # 2) Adapters disabled -> original module path.
    wrapper.enable_adapters(False)
    y_original = wrapper(x)
    jax.block_until_ready(y_original)
    wrapper.enable_adapters(True)

    # 3) Mixed-batch path (per-sample adapter selection), single kernel call.
    adapter_names = ["default", "__base__", "default", "__base__",
                     "default", "default", "__base__", "default"]
    y_mixed = wrapper(x, adapter_names=adapter_names)
    jax.block_until_ready(y_mixed)

    # Reference checks against plain jnp.
    ref_adapter = x @ (w0 + dw).T + (b0 + 0.1)
    ref_original = x @ w0.T + b0
    ref_mixed = jnp.where(
        jnp.asarray([a == "default" for a in adapter_names])[:, None],
        ref_adapter, ref_original)

    assert jnp.allclose(y_adapter, ref_adapter, atol=1e-4, rtol=1e-4)
    assert jnp.allclose(y_original, ref_original, atol=1e-4, rtol=1e-4)
    assert jnp.allclose(y_mixed, ref_mixed, atol=1e-4, rtol=1e-4)

    print("KERNEL_OK")
</pallas_src>

<mosaic_0001>
module attributes {stable_mosaic.version = 11 : i64} {
  func.func @_stacked_linear_kernel(%arg0: i32, %arg1: i32, %arg2: i32, %arg3: memref<1xi32, #tpu.memory_space<smem>>, %arg4: memref<128x128xf32, #tpu.memory_space<vmem>>, %arg5: memref<1x128x128xf32, #tpu.memory_space<vmem>>, %arg6: memref<1x1x128xf32, #tpu.memory_space<vmem>>, %arg7: memref<128x128xf32, #tpu.memory_space<vmem>>, %arg8: memref<128x128xf32, #tpu.memory_space<vmem>>) attributes {dimension_semantics = [#tpu.dimension_semantics<parallel>, #tpu.dimension_semantics<arbitrary>, #tpu.dimension_semantics<arbitrary>], iteration_bounds = array<i64: 1, 1, 1>, scalar_prefetch = 1 : i64, scratch_operands = 1 : i64, tpu.core_type = #tpu.core_type<tc>, window_params = [{transform_indices = @transform_0, window_bounds = array<i64: 128, 128>}, {transform_indices = @transform_1, window_bounds = array<i64: 1, 128, 128>}, {transform_indices = @transform_2, window_bounds = array<i64: 1, 1, 128>}, {transform_indices = @transform_3, window_bounds = array<i64: 128, 128>}]} {
    %c0_i32 = arith.constant 0 : i32
    %0 = arith.cmpi eq, %arg2, %c0_i32 : i32
    %1 = arith.extui %0 : i1 to i32
    %c0_i32_0 = arith.constant 0 : i32
    %2 = arith.cmpi ne, %1, %c0_i32_0 : i32
    scf.if %2 {
      %c0_11 = arith.constant 0 : index
      %c0_12 = arith.constant 0 : index
      %c0_13 = arith.constant 0 : index
      %13 = vector.load %arg6[%c0_11, %c0_12, %c0_13] : memref<1x1x128xf32, #tpu.memory_space<vmem>>, vector<1x1x128xf32>
      %14 = vector.shape_cast %13 : vector<1x1x128xf32> to vector<1x128xf32>
      %15 = vector.shape_cast %14 : vector<1x128xf32> to vector<1x128xf32>
      %16 = vector.broadcast %15 : vector<1x128xf32> to vector<128x128xf32>
      %c0_14 = arith.constant 0 : index
      %c0_15 = arith.constant 0 : index
      %17 = vector.load %arg8[%c0_14, %c0_15] : memref<128x128xf32, #tpu.memory_space<vmem>>, vector<128x128xf32>
      tpu.vector_store %arg8[%c0_14, %c0_15], %16 {strides = array<i32>} : memref<128x128xf32, #tpu.memory_space<vmem>>, vector<128x128xf32>,
    } else {
    }
    %c0 = arith.constant 0 : index
    %c0_1 = arith.constant 0 : index
    %3 = vector.load %arg8[%c0, %c0_1] : memref<128x128xf32, #tpu.memory_space<vmem>>, vector<128x128xf32>
    %c0_2 = arith.constant 0 : index
    %c0_3 = arith.constant 0 : index
    %4 = vector.load %arg4[%c0_2, %c0_3] : memref<128x128xf32, #tpu.memory_space<vmem>>, vector<128x128xf32>
    %c0_4 = arith.constant 0 : index
    %c0_5 = arith.constant 0 : index
    %c0_6 = arith.constant 0 : index
    %5 = vector.load %arg5[%c0_4, %c0_5, %c0_6] : memref<1x128x128xf32, #tpu.memory_space<vmem>>, vector<1x128x128xf32>
    %6 = vector.shape_cast %5 : vector<1x128x128xf32> to vector<128x128xf32>
    %cst = arith.constant dense<0.000000e+00> : vector<128x128xf32>
    %7 = tpu.matmul %4, %6, %cst {dimension_numbers = #tpu.dot_dimension_numbers<[1], [0], [0], [1], [0, 0, 1, 1], [], []>} : vector<128x128xf32>, vector<128x128xf32>, vector<128x128xf32> -> vector<128x128xf32>
    %8 = arith.addf %3, %7 : vector<128x128xf32>
    %c0_7 = arith.constant 0 : index
    %c0_8 = arith.constant 0 : index
    %9 = vector.load %arg8[%c0_7, %c0_8] : memref<128x128xf32, #tpu.memory_space<vmem>>, vector<128x128xf32>
    tpu.vector_store %arg8[%c0_7, %c0_8], %8 {strides = array<i32>} : memref<128x128xf32, #tpu.memory_space<vmem>>, vector<128x128xf32>,
    %c0_i32_9 = arith.constant 0 : i32
    %10 = arith.cmpi eq, %arg2, %c0_i32_9 : i32
    %11 = arith.extui %10 : i1 to i32
    %c0_i32_10 = arith.constant 0 : i32
    %12 = arith.cmpi ne, %11, %c0_i32_10 : i32
    scf.if %12 {
      %c0_11 = arith.constant 0 : index
      %c0_12 = arith.constant 0 : index
      %13 = vector.load %arg8[%c0_11, %c0_12] : memref<128x128xf32, #tpu.memory_space<vmem>>, vector<128x128xf32>
      %c0_13 = arith.constant 0 : index
      %c0_14 = arith.constant 0 : index
      %14 = vector.load %arg7[%c0_13, %c0_14] : memref<128x128xf32, #tpu.memory_space<vmem>>, vector<128x128xf32>
      tpu.vector_store %arg7[%c0_13, %c0_14], %13 {strides = array<i32>} : memref<128x128xf32, #tpu.memory_space<vmem>>, vector<128x128xf32>,
    } else {
    }
    return
  }
  func.func @transform_0(%arg0: i32, %arg1: i32, %arg2: i32, %arg3: memref<1xi32, #tpu.memory_space<smem>>) -> (i32, i32) {
    %c0_i32 = arith.constant 0 : i32
    return %arg1, %arg2 : i32, i32
  }
  func.func @transform_1(%arg0: i32, %arg1: i32, %arg2: i32, %arg3: memref<1xi32, #tpu.memory_space<smem>>) -> (i32, i32, i32) {
    %0 = arith.index_cast %arg1 : i32 to index
    %1 = memref.load %arg3[%0] : memref<1xi32, #tpu.memory_space<smem>>
    %c0_i32 = arith.constant 0 : i32
    return %1, %arg2, %arg0 : i32, i32, i32
  }
  func.func @transform_2(%arg0: i32, %arg1: i32, %arg2: i32, %arg3: memref<1xi32, #tpu.memory_space<smem>>) -> (i32, i32, i32) {
    %0 = arith.index_cast %arg1 : i32 to index
    %1 = memref.load %arg3[%0] : memref<1xi32, #tpu.memory_space<smem>>
    %c0_i32 = arith.constant 0 : i32
    %c0_i32_0 = arith.constant 0 : i32
    return %1, %c0_i32, %arg0 : i32, i32, i32
  }
  func.func @transform_3(%arg0: i32, %arg1: i32, %arg2: i32, %arg3: memref<1xi32, #tpu.memory_space<smem>>) -> (i32, i32) {
    %c0_i32 = arith.constant 0 : i32
    return %arg1, %arg0 : i32, i32
  }
}

</mosaic_0001>

<bundles_post_ra>
// kernel: _single_adapter_call.1
= control target key start
LH: loop header
LB: loop body
LE: loop exit
PB: predicated region body
PF: predicated region fallthrough
CT: control target
= control target key end

     0   :  { %s645_s0 = inlined_call_operand.<no memory space> [shape: s32[1], index: 0, kind: input, shape index: {}]   ;;  %s646_s1 = inlined_call_operand.vmem [shape: f32[128,128], index: 1, kind: input, shape index: {}]   ;;  %s647_s2 = inlined_call_operand.vmem [shape: f32[1,128,128], index: 2, kind: input, shape index: {}]   ;;  %s648_s3 = inlined_call_operand.vmem [shape: f32[1,1,128], index: 3, kind: input, shape index: {}]   ;;  %s649_s4 = inlined_call_operand.vmem [shape: f32[128,128], index: 4, kind: output, shape index: {}]  }
   0x1   :  { %p39_p0 = scmp.lt.s32.totalorder %s645_s0, 0  ;;  %v93_v0 = vld [vmem:[%s646_s1] sm:$0xff]  ;;  %v94_v26 = vld [vmem:[%s646_s1 + $0x8] sm:$0xff]  ;;  %v95_v28 = vld [vmem:[%s646_s1 + $0x10] sm:$0xff] }
   0x2   :  { %v101_v1 = vld [vmem:[%s646_s1 + $0x40] sm:$0xff]  ;;  %418 = vmatprep.mubr.f32.mxu0 %v93_v0  ;;  %v102_v27 = vld [vmem:[%s646_s1 + $0x48] sm:$0xff]  ;;  %v103_v29 = vld [vmem:[%s646_s1 + $0x50] sm:$0xff] }
   0x3   :  { %430 = vmatprep.mubr.f32.mxu1 %v101_v1  ;;  %s651_s0 = smov (!%p39_p0, %s645_s0), 0  ;;  %v96_v30 = vld [vmem:[%s646_s1 + $0x18] sm:$0xff]  ;;  %v97_v32 = vld [vmem:[%s646_s1 + $0x20] sm:$0xff]  ;;  %v98_v34 = vld [vmem:[%s646_s1 + $0x28] sm:$0xff] }
   0x4   :  { %s353_s23 = sshll.u32 %s651_s0, 7  ;;  %v104_v31 = vld [vmem:[%s646_s1 + $0x58] sm:$0xff]  ;;  %v105_v33 = vld [vmem:[%s646_s1 + $0x60] sm:$0xff]  ;;  %v106_v35 = vld [vmem:[%s646_s1 + $0x68] sm:$0xff]  ;;  %s48_s29 = scalar_lea.vmem %s648_s3, %s651_s0 }
   0x5   :  { %s533_s26 = scalar_lea.vmem %s647_s2, %s353_s23  ;;  %v99_v36 = vld [vmem:[%s646_s1 + $0x30] sm:$0xff]  ;;  %v100_v38 = vld [vmem:[%s646_s1 + $0x38] sm:$0xff]  ;;  %v352_v40 = vld [vmem:[%s48_s29] ss:$0 sm:$0xff] }
   0x6   :  { %v109_v2 = vld [vmem:[%s533_s26] sm:$0xff]  ;;  %v110_v3 = vld [vmem:[%s533_s26 + $0x8] sm:$0xff]  ;;  %v111_v4 = vld [vmem:[%s533_s26 + $0x10] sm:$0xff] }
   0x7   :  { %v442_v5 = vpack.c.bf16 %v110_v3, %v109_v2  ;;  %v112_v6 = vld [vmem:[%s533_s26 + $0x18] sm:$0xff]  ;;  %v113_v8 = vld [vmem:[%s533_s26 + $0x20] sm:$0xff]  ;;  %v114_v9 = vld [vmem:[%s533_s26 + $0x28] sm:$0xff] }
   0x8   :  { %v446_v7 = vpack.c.bf16 %v112_v6, %v111_v4  ;;  %v450_v10 = vpack.c.bf16 %v114_v9, %v113_v8  ;;  %v115_v11 = vld [vmem:[%s533_s26 + $0x30] sm:$0xff]  ;;  %v116_v12 = vld [vmem:[%s533_s26 + $0x38] sm:$0xff]  ;;  %v117_v14 = vld [vmem:[%s533_s26 + $0x40] sm:$0xff] }
   0x9   :  { %443 = vmatprep.subr.bf16.mxu0 %v442_v5  ;;  %474 = vmatprep.subr.bf16.mxu1 %v442_v5  ;;  %v454_v13 = vpack.c.bf16 %v116_v12, %v115_v11  ;;  %v118_v15 = vld [vmem:[%s533_s26 + $0x48] sm:$0xff]  ;;  %v119_v17 = vld [vmem:[%s533_s26 + $0x50] sm:$0xff]  ;;  %v120_v18 = vld [vmem:[%s533_s26 + $0x58] sm:$0xff] }
   0xa   :  { %445 = vmatpush3.bf16.msra.mxu0 %v442_v5  ;;  %482 = vmatpush3.bf16.msra.mxu1 %v442_v5  ;;  %v458_v16 = vpack.c.bf16 %v118_v15, %v117_v14  ;;  %v462_v19 = vpack.c.bf16 %v120_v18, %v119_v17  ;;  %v121_v20 = vld [vmem:[%s533_s26 + $0x60] sm:$0xff]  ;;  %v122_v21 = vld [vmem:[%s533_s26 + $0x68] sm:$0xff]  ;;  %v123_v23 = vld [vmem:[%s533_s26 + $0x70] sm:$0xff] }
   0xb   :  { %447 = vmatprep.subr.bf16.mxu0 %v446_v7  ;;  %475 = vmatprep.subr.bf16.mxu1 %v446_v7  ;;  %v466_v22 = vpack.c.bf16 %v122_v21, %v121_v20  ;;  %v124_v24 = vld [vmem:[%s533_s26 + $0x78] sm:$0xff]  ;;  %v107_v37 = vld [vmem:[%s646_s1 + $0x70] sm:$0xff] }
   0xc   :  { %v470_v25 = vpack.c.bf16 %v124_v24, %v123_v23  ;;  %v108_v39 = vld [vmem:[%s646_s1 + $0x78] sm:$0xff] }
   0xe   :  { %449 = vmatpush3.bf16.msra.mxu0 %v446_v7  ;;  %483 = vmatpush3.bf16.msra.mxu1 %v446_v7 }
   0xf   :  { %451 = vmatprep.subr.bf16.mxu0 %v450_v10  ;;  %476 = vmatprep.subr.bf16.mxu1 %v450_v10 }
  0x12   :  { %453 = vmatpush3.bf16.msra.mxu0 %v450_v10  ;;  %484 = vmatpush3.bf16.msra.mxu1 %v450_v10 }
  0x13   :  { %455 = vmatprep.subr.bf16.mxu0 %v454_v13  ;;  %477 = vmatprep.subr.bf16.mxu1 %v454_v13 }
  0x16   :  { %457 = vmatpush3.bf16.msra.mxu0 %v454_v13  ;;  %485 = vmatpush3.bf16.msra.mxu1 %v454_v13 }
  0x17   :  { %459 = vmatprep.subr.bf16.mxu0 %v458_v16  ;;  %478 = vmatprep.subr.bf16.mxu1 %v458_v16 }
  0x1a   :  { %461 = vmatpush3.bf16.msra.mxu0 %v458_v16  ;;  %486 = vmatpush3.bf16.msra.mxu1 %v458_v16 }
  0x1b   :  { %463 = vmatprep.subr.bf16.mxu0 %v462_v19  ;;  %479 = vmatprep.subr.bf16.mxu1 %v462_v19 }
  0x1e   :  { %465 = vmatpush3.bf16.msra.mxu0 %v462_v19  ;;  %487 = vmatpush3.bf16.msra.mxu1 %v462_v19 }
  0x1f   :  { %467 = vmatprep.subr.bf16.mxu0 %v466_v22  ;;  %480 = vmatprep.subr.bf16.mxu1 %v466_v22 }
  0x22   :  { %469 = vmatpush3.bf16.msra.mxu0 %v466_v22  ;;  %488 = vmatpush3.bf16.msra.mxu1 %v466_v22 }
  0x23   :  { %471 = vmatprep.subr.bf16.mxu0 %v470_v25  ;;  %481 = vmatprep.subr.bf16.mxu1 %v470_v25 }
  0x26   :  { %473 = vmatpush3.bf16.msra.mxu0 %v470_v25  ;;  %489 = vmatpush3.bf16.msra.mxu1 %v470_v25 }
  0x29   :  { %419 = vmatmul.mubr.f32.vlgmr.msra.gmra.mrb[0].mxu0 %v94_v26  ;;  %431 = vmatmul.mubr.f32.vlgmr.msra.gmra.mrb[0].mxu1 %v102_v27 }
  0x2a   :  { %421 = vmatprep.mubr.f32.mxu0 %v95_v28  ;;  %433 = vmatprep.mubr.f32.mxu1 %v103_v29 }
  0x2d   :  { %422 = vmatmul.mubr.f32.gmra.mrb[2].mxu0 %v96_v30  ;;  %434 = vmatmul.mubr.f32.gmra.mrb[2].mxu1 %v104_v31 }
  0x2e   :  { %424 = vmatprep.mubr.f32.mxu0 %v97_v32  ;;  %436 = vmatprep.mubr.f32.mxu1 %v105_v33 }
  0x31   :  { %425 = vmatmul.mubr.f32.gmra.mrb[4].mxu0 %v98_v34  ;;  %437 = vmatmul.mubr.f32.gmra.mrb[4].mxu1 %v106_v35 }
  0x32   :  { %427 = vmatprep.mubr.f32.mxu0 %v99_v36  ;;  %439 = vmatprep.mubr.f32.mxu1 %v107_v37 }
  0x35   :  { %428 = vmatmul.mubr.f32.gmra.mrb[6].mxu0 %v100_v38  ;;  %440 = vmatmul.mubr.f32.gmra.mrb[6].mxu1 %v108_v39 }
  0xfc   :  { %v420_v41 = vpop.f32.mrb[0].mxu0  ;;  %v432_v42 = vpop.f32.mrb[0].mxu1 }
  0xfd   :  { %v271_v43 = vadd.f32 %v420_v41, %v352_v40  ;;  %v279_v44 = vadd.f32 %v432_v42, %v352_v40  ;;  %v191_v45 = vpop.f32.mrb[1].mxu0  ;;  %v231_v46 = vpop.f32.mrb[1].mxu1 }
  0xfe   :  { %v270_v47 = vadd.f32 %v352_v40, %v191_v45  ;;  %v278_v48 = vadd.f32 %v352_v40, %v231_v46 }
  0xff   :  { %322 = vst [vmem:[%s649_s4 + $0x8] sm:$0xff] %v271_v43  ;;  %330 = vst [vmem:[%s649_s4 + $0x48] sm:$0xff] %v279_v44 }
 0x100   :  { %321 = vst [vmem:[%s649_s4] sm:$0xff] %v270_v47  ;;  %329 = vst [vmem:[%s649_s4 + $0x40] sm:$0xff] %v278_v48  ;;  %v423_v49 = vpop.f32.mrb[2].mxu0  ;;  %v435_v50 = vpop.f32.mrb[2].mxu1 }
 0x101   :  { %v273_v51 = vadd.f32 %v423_v49, %v352_v40  ;;  %v281_v52 = vadd.f32 %v435_v50, %v352_v40  ;;  %v201_v53 = vpop.f32.mrb[3].mxu0  ;;  %v241_v54 = vpop.f32.mrb[3].mxu1 }
 0x102   :  { %v272_v55 = vadd.f32 %v352_v40, %v201_v53  ;;  %v280_v56 = vadd.f32 %v352_v40, %v241_v54 }
 0x103   :  { %324 = vst [vmem:[%s649_s4 + $0x18] sm:$0xff] %v273_v51  ;;  %332 = vst [vmem:[%s649_s4 + $0x58] sm:$0xff] %v281_v52 }
 0x104   :  { %323 = vst [vmem:[%s649_s4 + $0x10] sm:$0xff] %v272_v55  ;;  %331 = vst [vmem:[%s649_s4 + $0x50] sm:$0xff] %v280_v56  ;;  %v426_v57 = vpop.f32.mrb[4].mxu0  ;;  %v438_v58 = vpop.f32.mrb[4].mxu1 }
 0x105   :  { %v275_v59 = vadd.f32 %v426_v57, %v352_v40  ;;  %v283_v60 = vadd.f32 %v438_v58, %v352_v40  ;;  %v211_v61 = vpop.f32.mrb[5].mxu0  ;;  %v251_v62 = vpop.f32.mrb[5].mxu1 }
 0x106   :  { %v274_v63 = vadd.f32 %v352_v40, %v211_v61  ;;  %v282_v0 = vadd.f32 %v352_v40, %v251_v62 }
 0x107   :  { %326 = vst [vmem:[%s649_s4 + $0x28] sm:$0xff] %v275_v59  ;;  %334 = vst [vmem:[%s649_s4 + $0x68] sm:$0xff] %v283_v60 }
 0x108   :  { %325 = vst [vmem:[%s649_s4 + $0x20] sm:$0xff] %v274_v63  ;;  %333 = vst [vmem:[%s649_s4 + $0x60] sm:$0xff] %v282_v0  ;;  %v429_v1 = vpop.f32.mrb[6].mxu0  ;;  %v441_v2 = vpop.f32.mrb[6].mxu1 }
 0x109   :  { %v277_v3 = vadd.f32 %v429_v1, %v352_v40  ;;  %v285_v4 = vadd.f32 %v441_v2, %v352_v40  ;;  %v221_v5 = vpop.f32.mrb[7].mxu0  ;;  %v261_v6 = vpop.f32.mrb[7].mxu1 }
 0x10a   :  { %v276_v7 = vadd.f32 %v352_v40, %v221_v5  ;;  %v284_v8 = vadd.f32 %v352_v40, %v261_v6 }
 0x10b   :  { %328 = vst [vmem:[%s649_s4 + $0x38] sm:$0xff] %v277_v3  ;;  %336 = vst [vmem:[%s649_s4 + $0x78] sm:$0xff] %v285_v4 }
 0x10c   :  { %327 = vst [vmem:[%s649_s4 + $0x30] sm:$0xff] %v276_v7  ;;  %335 = vst [vmem:[%s649_s4 + $0x70] sm:$0xff] %v284_v8 }

</bundles_post_ra>
